<compile_context>
chip_gen: v6e
topology: v6e:2x2x1
jax: 0.10.0
libtpu: 0.0.40
codegen_flags: <defaults>
</compile_context>

<pallas_src>
import functools

import numpy as np
import jax
import jax.numpy as jnp
from jax.experimental import pallas as pl
from jax.experimental.pallas import tpu as pltpu


def _next_greater_power_of_2(x: int) -> int:
    return 2 ** (x - 1).bit_length()


# ---------------------------------------------------------------------------
# Deterministic "parameters": HTK mel filterbank (torchaudio MelScale
# defaults, norm=None) folded into the real-DFT cos/sin matrices.
# ---------------------------------------------------------------------------
def _hz_to_mel(f):
    return 2595.0 * np.log10(1.0 + np.asarray(f, dtype=np.float64) / 700.0)


def _mel_to_hz(m):
    return 700.0 * (10.0 ** (np.asarray(m, dtype=np.float64) / 2595.0) - 1.0)


def melscale_fbanks(n_freqs, f_min, f_max, n_mels, sample_rate):
    """HTK mel scale, norm=None — matches torchaudio.transforms.MelScale."""
    all_freqs = np.linspace(0.0, sample_rate // 2, n_freqs)
    m_pts = np.linspace(_hz_to_mel(f_min), _hz_to_mel(f_max), n_mels + 2)
    f_pts = _mel_to_hz(m_pts)
    f_diff = f_pts[1:] - f_pts[:-1]
    slopes = f_pts[None, :] - all_freqs[:, None]            # (n_freqs, n_mels+2)
    down = -slopes[:, :-2] / f_diff[:-1]
    up = slopes[:, 2:] / f_diff[1:]
    fb = np.maximum(0.0, np.minimum(down, up))
    return fb                                                # float64 (n_freqs, n_mels)


def _folded_dft_mel_weights(t_eff, n_dft, sample_rate, f_min, f_max, n_mels):
    """W = [cos_dft @ fb | (-sin_dft) @ fb], shape (t_eff, 2*n_mels), float32."""
    n_freq = n_dft // 2 + 1
    t = np.arange(t_eff, dtype=np.float64)[:, None]
    k = np.arange(n_freq, dtype=np.float64)[None, :]
    ang = 2.0 * np.pi * t * k / float(n_dft)
    cos_m = np.cos(ang)                                      # real-part basis
    sin_m = -np.sin(ang)                                     # imag-part basis (sign baked in)
    fb = melscale_fbanks(n_freq, f_min, f_max, n_mels, sample_rate)
    c = cos_m @ fb                                           # (t_eff, n_mels)
    s = sin_m @ fb                                           # (t_eff, n_mels)
    return np.concatenate([c, s], axis=1).astype(np.float32)  # (t_eff, 2*n_mels)


def _build_weights(t_eff, n_dft, sample_rate, f_min, f_max, n_mels):
    """bf16 folded DFT+mel weights, exactly as the kernel consumes them."""
    w = _folded_dft_mel_weights(t_eff, n_dft, sample_rate, f_min, f_max, n_mels)
    return jnp.asarray(w, dtype=jnp.bfloat16)


# ---------------------------------------------------------------------------
# Pallas kernel.
#   x_ref   : (M, tb, t_eff)      bf16   (mic-major, frames on sublanes)
#   w_ref   : (t_eff, 2*n_mels)   bf16   (resident across the grid)
#   out_ref : (M*M, tb, 2*n_mels) f32    lanes = [Re | Im]
# ---------------------------------------------------------------------------
def _mel_cross_kernel(x_ref, w_ref, out_ref, *, m, n_mels):
    two_k = 2 * n_mels
    tb = x_ref.shape[1]
    w = w_ref[...]

    # Lane mask distinguishing the Re half ([0, n_mels)) from the Im half.
    lane = jax.lax.broadcasted_iota(jnp.int32, (tb, two_k), dimension=1)
    is_re = lane < n_mels

    # Per-mic fused rDFT + mel filterbank: M small MXU matmuls on full
    # (tb, t_eff) slabs (no 3-D reshapes, no sublane repacks).
    mels, rolls, dup_res, sdup_ims = [], [], [], []
    for n in range(m):
        mel = jnp.dot(x_ref[n], w, preferred_element_type=jnp.float32)  # (tb, 2K)
        roll = pltpu.roll(mel, shift=n_mels, axis=1)   # swap Re/Im lane halves (XLU)
        mels.append(mel)
        rolls.append(roll)
        dup_res.append(jnp.where(is_re, mel, roll))    # [Re | Re]  of mel_j
        sdup_ims.append(jnp.where(is_re, roll, -mel))  # [Im | -Im] of mel_j

    # cross[n, j] = mel_n * conj(mel_j):
    #   lanes <  K : Re = Re_n*Re_j + Im_n*Im_j
    #   lanes >= K : Im = Im_n*Re_j - Re_n*Im_j
    # Each pair is pure lane-full VPU math + one unmasked full-tile store.
    for n in range(m):
        for j in range(m):
            out_ref[n * m + j] = mels[n] * dup_res[j] + rolls[n] * sdup_ims[j]


def _choose_tb(bf, m, t_eff, two_k):
    """Frames per grid step, sized by a VMEM budget (not an MXU-row count)."""
    out_b = m * m * two_k * 4              # f32 output block bytes per frame
    in_b = m * t_eff * 2                   # bf16 input block bytes per frame
    inter_b = 4 * m * two_k * 4            # mel/roll/dup_re/sdup_im slabs per frame
    per_frame = 2 * out_b + 2 * in_b + inter_b   # double-buffered in/out blocks
    budget = 32 * 1024 * 1024              # target; vmem_limit is 48 MiB (v7x phys 64)
    tb = max(1, budget // per_frame)
    tb = min(tb, 1024)
    # Keep >= ~4 grid steps so the "parallel" axis can shard across the two
    # v7x TensorCores and the DMA pipeline has iterations to overlap.
    tb = min(tb, -(-bf // 4))
    # Sublane alignment: bf16 input packs 16 rows per vreg; f32 output needs 8.
    tb = max(16, (tb // 16) * 16)
    return tb


def mel_cross_spectra(x, *, sample_rate=16000, n_dft=512, f_min=0.0,
                      f_max=None, n_mels=128):
    """Pallas implementation of MelCrossSpectra.forward (phase_only=False)."""
    # TODO(synk): phase_only=True branch (torch.angle) is not implemented.
    n_dft = _next_greater_power_of_2(n_dft)
    if f_max is None:
        f_max = float(sample_rate // 2)
    B, F, M, T = x.shape
    t_eff = min(T, n_dft)            # rfft(n=n_dft) truncates; zero-pad is implicit
    two_k = 2 * n_mels

    w = _build_weights(t_eff, n_dft, sample_rate, f_min, f_max, n_mels)

    bf = B * F
    tb = _choose_tb(bf, M, t_eff, two_k)
    bf_pad = -(-bf // tb) * tb
    grid = (bf_pad // tb,)

    # Mic-major layout (M, frames, t_eff): every in-kernel slab is a full
    # (tb, lanes) tile, so there is no M<8 sublane padding or masked store.
    x2 = x[..., :t_eff].astype(jnp.bfloat16).reshape(bf, M, t_eff)
    x2 = jnp.transpose(x2, (1, 0, 2))                          # (M, bf, t_eff)
    if bf_pad != bf:
        x2 = jnp.concatenate(
            [x2, jnp.zeros((M, bf_pad - bf, t_eff), jnp.bfloat16)], axis=1)

    kernel = functools.partial(_mel_cross_kernel, m=M, n_mels=n_mels)
    out = pl.pallas_call(
        kernel,
        out_shape=jax.ShapeDtypeStruct((M * M, bf_pad, two_k), jnp.float32),
        grid_spec=pltpu.PrefetchScalarGridSpec(
            num_scalar_prefetch=0,
            grid=grid,
            in_specs=[
                pl.BlockSpec((M, tb, t_eff), lambda i: (0, i, 0)),   # mic-major x
                pl.BlockSpec((t_eff, two_k), lambda i: (0, 0)),      # resident weights
            ],
            out_specs=pl.BlockSpec((M * M, tb, two_k), lambda i: (0, i, 0)),
        ),
        compiler_params=pltpu.CompilerParams(
            dimension_semantics=("parallel",),
            vmem_limit_bytes=48 * 1024 * 1024),
    )(x2, w)

    out = out[:, :bf]                                          # (M*M, bf, 2K)
    out = out.reshape(M, M, B, F, two_k)
    out = jnp.transpose(out, (2, 3, 0, 1, 4))                  # (B, F, M, M, 2K)
    return jax.lax.complex(out[..., :n_mels], out[..., n_mels:])   # complex64


# ---------------------------------------------------------------------------
# References for validation.
# ---------------------------------------------------------------------------
def _reference(x_np, sample_rate, n_dft, f_min, f_max, n_mels):
    """Mirrors the PyTorch module (rfft + MelScale + outer conj product)."""
    n_dft = _next_greater_power_of_2(n_dft)
    if f_max is None:
        f_max = float(sample_rate // 2)
    x_fft = np.fft.rfft(x_np.astype(np.float64), n=n_dft, axis=-1)   # (B,F,M,NF)
    fb = melscale_fbanks(n_dft // 2 + 1, f_min, f_max, n_mels, sample_rate)
    mel = x_fft @ fb                                                 # (B,F,M,K)
    return mel[:, :, :, None, :] * np.conj(mel)[:, :, None, :, :]    # (B,F,M,M,K)


def _reference_from_weights(x, w_bf16, n_mels):
    """Exact-math reference on the same bf16-quantized operands the kernel sees."""
    t_eff = w_bf16.shape[0]
    xq = np.asarray(x[..., :t_eff].astype(jnp.bfloat16).astype(jnp.float32),
                    dtype=np.float64)
    wq = np.asarray(w_bf16.astype(jnp.float32), dtype=np.float64)
    melri = xq @ wq                                                  # (B,F,M,2K)
    mel = melri[..., :n_mels] + 1j * melri[..., n_mels:]
    return mel[:, :, :, None, :] * np.conj(mel)[:, :, None, :, :]


if __name__ == "__main__":
    key = jax.random.PRNGKey(0)
    B, F, M, T = 2, 32, 4, 96
    sample_rate, n_dft, n_mels = 16000, 256, 64

    x = jax.random.normal(key, (B, F, M, T), dtype=jnp.float32)

    out = mel_cross_spectra(
        x, sample_rate=sample_rate, n_dft=n_dft, n_mels=n_mels)
    out = jax.block_until_ready(out)

    assert out.shape == (B, F, M, M, n_mels)
    assert out.dtype == jnp.complex64
    out_np = np.asarray(out)

    # 1) Tight element-wise check of the kernel logic: exact-math reference on
    #    the same bf16-quantized x / W (catches layout, indexing, math bugs).
    n_dft_eff = _next_greater_power_of_2(n_dft)
    t_eff = min(T, n_dft_eff)
    w_bf16 = _build_weights(t_eff, n_dft_eff, sample_rate, 0.0,
                            float(sample_rate // 2), n_mels)
    ref_q = _reference_from_weights(x, w_bf16, n_mels)
    scale = float(np.max(np.abs(ref_q)))
    np.testing.assert_allclose(out_np.real, ref_q.real, rtol=0.0, atol=1e-4 * scale)
    np.testing.assert_allclose(out_np.imag, ref_q.imag, rtol=0.0, atol=1e-4 * scale)

    # 2) End-to-end check vs. the full-precision rfft+mel reference; the looser
    #    tolerance only bounds the bf16 input-quantization error (logic bugs are
    #    already caught by the tight check above).
    ref = _reference(np.asarray(x), sample_rate, n_dft, 0.0, None, n_mels)
    np.testing.assert_allclose(out_np.real, ref.real, rtol=0.0, atol=3e-2 * scale)
    np.testing.assert_allclose(out_np.imag, ref.imag, rtol=0.0, atol=3e-2 * scale)

    print("KERNEL_OK")
</pallas_src>

<mosaic_0001>
module attributes {stable_mosaic.version = 11 : i64} {
  func.func @_mel_cross_kernel(%arg0: i32, %arg1: memref<4x16x96xbf16, #tpu.memory_space<vmem>>, %arg2: memref<96x128xbf16, #tpu.memory_space<vmem>>, %arg3: memref<16x16x128xf32, #tpu.memory_space<vmem>>) attributes {dimension_semantics = [#tpu.dimension_semantics<parallel>], iteration_bounds = array<i64: 4>, scalar_prefetch = 0 : i64, scratch_operands = 0 : i64, tpu.core_type = #tpu.core_type<tc>, window_params = [{transform_indices = @transform_0, window_bounds = array<i64: 4, 16, 96>}, {pipeline_mode = #tpu.pipeline_mode<synchronous>, transform_indices = @transform_1, window_bounds = array<i64: 96, 128>}, {transform_indices = @transform_2, window_bounds = array<i64: 16, 16, 128>}]} {
    %c0 = arith.constant 0 : index
    %c0_0 = arith.constant 0 : index
    %0 = vector.load %arg2[%c0, %c0_0] : memref<96x128xbf16, #tpu.memory_space<vmem>>, vector<96x128xbf16>
    %1 = tpu.iota {dimensions = array<i32: 1>} : vector<16x128xi32>
    %c64_i32 = arith.constant 64 : i32
    %2 = vector.broadcast %c64_i32 : i32 to vector<16x128xi32>
    %3 = arith.cmpi slt, %1, %2 : vector<16x128xi32>
    %c0_1 = arith.constant 0 : index
    %c0_2 = arith.constant 0 : index
    %c0_3 = arith.constant 0 : index
    %4 = vector.load %arg1[%c0_1, %c0_2, %c0_3] : memref<4x16x96xbf16, #tpu.memory_space<vmem>>, vector<1x16x96xbf16>
    %5 = vector.shape_cast %4 : vector<1x16x96xbf16> to vector<16x96xbf16>
    %cst = arith.constant dense<0.000000e+00> : vector<16x128xf32>
    %6 = tpu.matmul %5, %0, %cst {dimension_numbers = #tpu.dot_dimension_numbers<[1], [0], [0], [1], [0, 0, 1, 1], [], []>} : vector<16x96xbf16>, vector<96x128xbf16>, vector<16x128xf32> -> vector<16x128xf32>
    %c64_i32_4 = arith.constant 64 : i32
    %7 = tpu.dynamic_rotate %6 by %c64_i32_4 dim 1 : vector<16x128xf32>, i32 -> vector<16x128xf32>
    %8 = arith.select %3, %6, %7 : vector<16x128xi1>, vector<16x128xf32>
    %cst_5 = arith.constant 0.000000e+00 : f32
    %9 = vector.broadcast %cst_5 : f32 to vector<16x128xf32>
    %10 = arith.subf %9, %6 : vector<16x128xf32>
    %11 = arith.select %3, %7, %10 : vector<16x128xi1>, vector<16x128xf32>
    %c1 = arith.constant 1 : index
    %c0_6 = arith.constant 0 : index
    %c0_7 = arith.constant 0 : index
    %12 = vector.load %arg1[%c1, %c0_6, %c0_7] : memref<4x16x96xbf16, #tpu.memory_space<vmem>>, vector<1x16x96xbf16>
    %13 = vector.shape_cast %12 : vector<1x16x96xbf16> to vector<16x96xbf16>
    %cst_8 = arith.constant dense<0.000000e+00> : vector<16x128xf32>
    %14 = tpu.matmul %13, %0, %cst_8 {dimension_numbers = #tpu.dot_dimension_numbers<[1], [0], [0], [1], [0, 0, 1, 1], [], []>} : vector<16x96xbf16>, vector<96x128xbf16>, vector<16x128xf32> -> vector<16x128xf32>
    %c64_i32_9 = arith.constant 64 : i32
    %15 = tpu.dynamic_rotate %14 by %c64_i32_9 dim 1 : vector<16x128xf32>, i32 -> vector<16x128xf32>
    %16 = arith.select %3, %14, %15 : vector<16x128xi1>, vector<16x128xf32>
    %cst_10 = arith.constant 0.000000e+00 : f32
    %17 = vector.broadcast %cst_10 : f32 to vector<16x128xf32>
    %18 = arith.subf %17, %14 : vector<16x128xf32>
    %19 = arith.select %3, %15, %18 : vector<16x128xi1>, vector<16x128xf32>
    %c2 = arith.constant 2 : index
    %c0_11 = arith.constant 0 : index
    %c0_12 = arith.constant 0 : index
    %20 = vector.load %arg1[%c2, %c0_11, %c0_12] : memref<4x16x96xbf16, #tpu.memory_space<vmem>>, vector<1x16x96xbf16>
    %21 = vector.shape_cast %20 : vector<1x16x96xbf16> to vector<16x96xbf16>
    %cst_13 = arith.constant dense<0.000000e+00> : vector<16x128xf32>
    %22 = tpu.matmul %21, %0, %cst_13 {dimension_numbers = #tpu.dot_dimension_numbers<[1], [0], [0], [1], [0, 0, 1, 1], [], []>} : vector<16x96xbf16>, vector<96x128xbf16>, vector<16x128xf32> -> vector<16x128xf32>
    %c64_i32_14 = arith.constant 64 : i32
    %23 = tpu.dynamic_rotate %22 by %c64_i32_14 dim 1 : vector<16x128xf32>, i32 -> vector<16x128xf32>
    %24 = arith.select %3, %22, %23 : vector<16x128xi1>, vector<16x128xf32>
    %cst_15 = arith.constant 0.000000e+00 : f32
    %25 = vector.broadcast %cst_15 : f32 to vector<16x128xf32>
    %26 = arith.subf %25, %22 : vector<16x128xf32>
    %27 = arith.select %3, %23, %26 : vector<16x128xi1>, vector<16x128xf32>
    %c3 = arith.constant 3 : index
    %c0_16 = arith.constant 0 : index
    %c0_17 = arith.constant 0 : index
    %28 = vector.load %arg1[%c3, %c0_16, %c0_17] : memref<4x16x96xbf16, #tpu.memory_space<vmem>>, vector<1x16x96xbf16>
    %29 = vector.shape_cast %28 : vector<1x16x96xbf16> to vector<16x96xbf16>
    %cst_18 = arith.constant dense<0.000000e+00> : vector<16x128xf32>
    %30 = tpu.matmul %29, %0, %cst_18 {dimension_numbers = #tpu.dot_dimension_numbers<[1], [0], [0], [1], [0, 0, 1, 1], [], []>} : vector<16x96xbf16>, vector<96x128xbf16>, vector<16x128xf32> -> vector<16x128xf32>
    %c64_i32_19 = arith.constant 64 : i32
    %31 = tpu.dynamic_rotate %30 by %c64_i32_19 dim 1 : vector<16x128xf32>, i32 -> vector<16x128xf32>
    %32 = arith.select %3, %30, %31 : vector<16x128xi1>, vector<16x128xf32>
    %cst_20 = arith.constant 0.000000e+00 : f32
    %33 = vector.broadcast %cst_20 : f32 to vector<16x128xf32>
    %34 = arith.subf %33, %30 : vector<16x128xf32>
    %35 = arith.select %3, %31, %34 : vector<16x128xi1>, vector<16x128xf32>
    %36 = arith.mulf %6, %8 : vector<16x128xf32>
    %37 = arith.mulf %7, %11 : vector<16x128xf32>
    %38 = arith.addf %36, %37 : vector<16x128xf32>
    %c0_21 = arith.constant 0 : index
    %c0_22 = arith.constant 0 : index
    %c0_23 = arith.constant 0 : index
    %39 = vector.load %arg3[%c0_21, %c0_22, %c0_23] : memref<16x16x128xf32, #tpu.memory_space<vmem>>, vector<1x16x128xf32>
    %40 = vector.shape_cast %39 : vector<1x16x128xf32> to vector<16x128xf32>
    %41 = vector.shape_cast %38 : vector<16x128xf32> to vector<1x16x128xf32>
    tpu.vector_store %arg3[%c0_21, %c0_22, %c0_23], %41 {strides = array<i32>} : memref<16x16x128xf32, #tpu.memory_space<vmem>>, vector<1x16x128xf32>,
    %42 = arith.mulf %6, %16 : vector<16x128xf32>
    %43 = arith.mulf %7, %19 : vector<16x128xf32>
    %44 = arith.addf %42, %43 : vector<16x128xf32>
    %c1_24 = arith.constant 1 : index
    %c0_25 = arith.constant 0 : index
    %c0_26 = arith.constant 0 : index
    %45 = vector.load %arg3[%c1_24, %c0_25, %c0_26] : memref<16x16x128xf32, #tpu.memory_space<vmem>>, vector<1x16x128xf32>
    %46 = vector.shape_cast %45 : vector<1x16x128xf32> to vector<16x128xf32>
    %47 = vector.shape_cast %44 : vector<16x128xf32> to vector<1x16x128xf32>
    tpu.vector_store %arg3[%c1_24, %c0_25, %c0_26], %47 {strides = array<i32>} : memref<16x16x128xf32, #tpu.memory_space<vmem>>, vector<1x16x128xf32>,
    %48 = arith.mulf %6, %24 : vector<16x128xf32>
    %49 = arith.mulf %7, %27 : vector<16x128xf32>
    %50 = arith.addf %48, %49 : vector<16x128xf32>
    %c2_27 = arith.constant 2 : index
    %c0_28 = arith.constant 0 : index
    %c0_29 = arith.constant 0 : index
    %51 = vector.load %arg3[%c2_27, %c0_28, %c0_29] : memref<16x16x128xf32, #tpu.memory_space<vmem>>, vector<1x16x128xf32>
    %52 = vector.shape_cast %51 : vector<1x16x128xf32> to vector<16x128xf32>
    %53 = vector.shape_cast %50 : vector<16x128xf32> to vector<1x16x128xf32>
    tpu.vector_store %arg3[%c2_27, %c0_28, %c0_29], %53 {strides = array<i32>} : memref<16x16x128xf32, #tpu.memory_space<vmem>>, vector<1x16x128xf32>,
    %54 = arith.mulf %6, %32 : vector<16x128xf32>
    %55 = arith.mulf %7, %35 : vector<16x128xf32>
    %56 = arith.addf %54, %55 : vector<16x128xf32>
    %c3_30 = arith.constant 3 : index
    %c0_31 = arith.constant 0 : index
    %c0_32 = arith.constant 0 : index
    %57 = vector.load %arg3[%c3_30, %c0_31, %c0_32] : memref<16x16x128xf32, #tpu.memory_space<vmem>>, vector<1x16x128xf32>
    %58 = vector.shape_cast %57 : vector<1x16x128xf32> to vector<16x128xf32>
    %59 = vector.shape_cast %56 : vector<16x128xf32> to vector<1x16x128xf32>
    tpu.vector_store %arg3[%c3_30, %c0_31, %c0_32], %59 {strides = array<i32>} : memref<16x16x128xf32, #tpu.memory_space<vmem>>, vector<1x16x128xf32>,
    %60 = arith.mulf %14, %8 : vector<16x128xf32>
    %61 = arith.mulf %15, %11 : vector<16x128xf32>
    %62 = arith.addf %60, %61 : vector<16x128xf32>
    %c4 = arith.constant 4 : index
    %c0_33 = arith.constant 0 : index
    %c0_34 = arith.constant 0 : index
    %63 = vector.load %arg3[%c4, %c0_33, %c0_34] : memref<16x16x128xf32, #tpu.memory_space<vmem>>, vector<1x16x128xf32>
    %64 = vector.shape_cast %63 : vector<1x16x128xf32> to vector<16x128xf32>
    %65 = vector.shape_cast %62 : vector<16x128xf32> to vector<1x16x128xf32>
    tpu.vector_store %arg3[%c4, %c0_33, %c0_34], %65 {strides = array<i32>} : memref<16x16x128xf32, #tpu.memory_space<vmem>>, vector<1x16x128xf32>,
    %66 = arith.mulf %14, %16 : vector<16x128xf32>
    %67 = arith.mulf %15, %19 : vector<16x128xf32>
    %68 = arith.addf %66, %67 : vector<16x128xf32>
    %c5 = arith.constant 5 : index
    %c0_35 = arith.constant 0 : index
    %c0_36 = arith.constant 0 : index
    %69 = vector.load %arg3[%c5, %c0_35, %c0_36] : memref<16x16x128xf32, #tpu.memory_space<vmem>>, vector<1x16x128xf32>
    %70 = vector.shape_cast %69 : vector<1x16x128xf32> to vector<16x128xf32>
    %71 = vector.shape_cast %68 : vector<16x128xf32> to vector<1x16x128xf32>
    tpu.vector_store %arg3[%c5, %c0_35, %c0_36], %71 {strides = array<i32>} : memref<16x16x128xf32, #tpu.memory_space<vmem>>, vector<1x16x128xf32>,
    %72 = arith.mulf %14, %24 : vector<16x128xf32>
    %73 = arith.mulf %15, %27 : vector<16x128xf32>
    %74 = arith.addf %72, %73 : vector<16x128xf32>
    %c6 = arith.constant 6 : index
    %c0_37 = arith.constant 0 : index
    %c0_38 = arith.constant 0 : index
    %75 = vector.load %arg3[%c6, %c0_37, %c0_38] : memref<16x16x128xf32, #tpu.memory_space<vmem>>, vector<1x16x128xf32>
    %76 = vector.shape_cast %75 : vector<1x16x128xf32> to vector<16x128xf32>
    %77 = vector.shape_cast %74 : vector<16x128xf32> to vector<1x16x128xf32>
    tpu.vector_store %arg3[%c6, %c0_37, %c0_38], %77 {strides = array<i32>} : memref<16x16x128xf32, #tpu.memory_space<vmem>>, vector<1x16x128xf32>,
    %78 = arith.mulf %14, %32 : vector<16x128xf32>
    %79 = arith.mulf %15, %35 : vector<16x128xf32>
    %80 = arith.addf %78, %79 : vector<16x128xf32>
    %c7 = arith.constant 7 : index
    %c0_39 = arith.constant 0 : index
    %c0_40 = arith.constant 0 : index
    %81 = vector.load %arg3[%c7, %c0_39, %c0_40] : memref<16x16x128xf32, #tpu.memory_space<vmem>>, vector<1x16x128xf32>
    %82 = vector.shape_cast %81 : vector<1x16x128xf32> to vector<16x128xf32>
    %83 = vector.shape_cast %80 : vector<16x128xf32> to vector<1x16x128xf32>
    tpu.vector_store %arg3[%c7, %c0_39, %c0_40], %83 {strides = array<i32>} : memref<16x16x128xf32, #tpu.memory_space<vmem>>, vector<1x16x128xf32>,
    %84 = arith.mulf %22, %8 : vector<16x128xf32>
    %85 = arith.mulf %23, %11 : vector<16x128xf32>
    %86 = arith.addf %84, %85 : vector<16x128xf32>
    %c8 = arith.constant 8 : index
    %c0_41 = arith.constant 0 : index
    %c0_42 = arith.constant 0 : index
    %87 = vector.load %arg3[%c8, %c0_41, %c0_42] : memref<16x16x128xf32, #tpu.memory_space<vmem>>, vector<1x16x128xf32>
    %88 = vector.shape_cast %87 : vector<1x16x128xf32> to vector<16x128xf32>
    %89 = vector.shape_cast %86 : vector<16x128xf32> to vector<1x16x128xf32>
    tpu.vector_store %arg3[%c8, %c0_41, %c0_42], %89 {strides = array<i32>} : memref<16x16x128xf32, #tpu.memory_space<vmem>>, vector<1x16x128xf32>,
    %90 = arith.mulf %22, %16 : vector<16x128xf32>
    %91 = arith.mulf %23, %19 : vector<16x128xf32>
    %92 = arith.addf %90, %91 : vector<16x128xf32>
    %c9 = arith.constant 9 : index
    %c0_43 = arith.constant 0 : index
    %c0_44 = arith.constant 0 : index
    %93 = vector.load %arg3[%c9, %c0_43, %c0_44] : memref<16x16x128xf32, #tpu.memory_space<vmem>>, vector<1x16x128xf32>
    %94 = vector.shape_cast %93 : vector<1x16x128xf32> to vector<16x128xf32>
    %95 = vector.shape_cast %92 : vector<16x128xf32> to vector<1x16x128xf32>
    tpu.vector_store %arg3[%c9, %c0_43, %c0_44], %95 {strides = array<i32>} : memref<16x16x128xf32, #tpu.memory_space<vmem>>, vector<1x16x128xf32>,
    %96 = arith.mulf %22, %24 : vector<16x128xf32>
    %97 = arith.mulf %23, %27 : vector<16x128xf32>
    %98 = arith.addf %96, %97 : vector<16x128xf32>
    %c10 = arith.constant 10 : index
    %c0_45 = arith.constant 0 : index
    %c0_46 = arith.constant 0 : index
    %99 = vector.load %arg3[%c10, %c0_45, %c0_46] : memref<16x16x128xf32, #tpu.memory_space<vmem>>, vector<1x16x128xf32>
    %100 = vector.shape_cast %99 : vector<1x16x128xf32> to vector<16x128xf32>
    %101 = vector.shape_cast %98 : vector<16x128xf32> to vector<1x16x128xf32>
    tpu.vector_store %arg3[%c10, %c0_45, %c0_46], %101 {strides = array<i32>} : memref<16x16x128xf32, #tpu.memory_space<vmem>>, vector<1x16x128xf32>,
    %102 = arith.mulf %22, %32 : vector<16x128xf32>
    %103 = arith.mulf %23, %35 : vector<16x128xf32>
    %104 = arith.addf %102, %103 : vector<16x128xf32>
    %c11 = arith.constant 11 : index
    %c0_47 = arith.constant 0 : index
    %c0_48 = arith.constant 0 : index
    %105 = vector.load %arg3[%c11, %c0_47, %c0_48] : memref<16x16x128xf32, #tpu.memory_space<vmem>>, vector<1x16x128xf32>
    %106 = vector.shape_cast %105 : vector<1x16x128xf32> to vector<16x128xf32>
    %107 = vector.shape_cast %104 : vector<16x128xf32> to vector<1x16x128xf32>
    tpu.vector_store %arg3[%c11, %c0_47, %c0_48], %107 {strides = array<i32>} : memref<16x16x128xf32, #tpu.memory_space<vmem>>, vector<1x16x128xf32>,
    %108 = arith.mulf %30, %8 : vector<16x128xf32>
    %109 = arith.mulf %31, %11 : vector<16x128xf32>
    %110 = arith.addf %108, %109 : vector<16x128xf32>
    %c12 = arith.constant 12 : index
    %c0_49 = arith.constant 0 : index
    %c0_50 = arith.constant 0 : index
    %111 = vector.load %arg3[%c12, %c0_49, %c0_50] : memref<16x16x128xf32, #tpu.memory_space<vmem>>, vector<1x16x128xf32>
    %112 = vector.shape_cast %111 : vector<1x16x128xf32> to vector<16x128xf32>
    %113 = vector.shape_cast %110 : vector<16x128xf32> to vector<1x16x128xf32>
    tpu.vector_store %arg3[%c12, %c0_49, %c0_50], %113 {strides = array<i32>} : memref<16x16x128xf32, #tpu.memory_space<vmem>>, vector<1x16x128xf32>,
    %114 = arith.mulf %30, %16 : vector<16x128xf32>
    %115 = arith.mulf %31, %19 : vector<16x128xf32>
    %116 = arith.addf %114, %115 : vector<16x128xf32>
    %c13 = arith.constant 13 : index
    %c0_51 = arith.constant 0 : index
    %c0_52 = arith.constant 0 : index
    %117 = vector.load %arg3[%c13, %c0_51, %c0_52] : memref<16x16x128xf32, #tpu.memory_space<vmem>>, vector<1x16x128xf32>
    %118 = vector.shape_cast %117 : vector<1x16x128xf32> to vector<16x128xf32>
    %119 = vector.shape_cast %116 : vector<16x128xf32> to vector<1x16x128xf32>
    tpu.vector_store %arg3[%c13, %c0_51, %c0_52], %119 {strides = array<i32>} : memref<16x16x128xf32, #tpu.memory_space<vmem>>, vector<1x16x128xf32>,
    %120 = arith.mulf %30, %24 : vector<16x128xf32>
    %121 = arith.mulf %31, %27 : vector<16x128xf32>
    %122 = arith.addf %120, %121 : vector<16x128xf32>
    %c14 = arith.constant 14 : index
    %c0_53 = arith.constant 0 : index
    %c0_54 = arith.constant 0 : index
    %123 = vector.load %arg3[%c14, %c0_53, %c0_54] : memref<16x16x128xf32, #tpu.memory_space<vmem>>, vector<1x16x128xf32>
    %124 = vector.shape_cast %123 : vector<1x16x128xf32> to vector<16x128xf32>
    %125 = vector.shape_cast %122 : vector<16x128xf32> to vector<1x16x128xf32>
    tpu.vector_store %arg3[%c14, %c0_53, %c0_54], %125 {strides = array<i32>} : memref<16x16x128xf32, #tpu.memory_space<vmem>>, vector<1x16x128xf32>,
    %126 = arith.mulf %30, %32 : vector<16x128xf32>
    %127 = arith.mulf %31, %35 : vector<16x128xf32>
    %128 = arith.addf %126, %127 : vector<16x128xf32>
    %c15 = arith.constant 15 : index
    %c0_55 = arith.constant 0 : index
    %c0_56 = arith.constant 0 : index
    %129 = vector.load %arg3[%c15, %c0_55, %c0_56] : memref<16x16x128xf32, #tpu.memory_space<vmem>>, vector<1x16x128xf32>
    %130 = vector.shape_cast %129 : vector<1x16x128xf32> to vector<16x128xf32>
    %131 = vector.shape_cast %128 : vector<16x128xf32> to vector<1x16x128xf32>
    tpu.vector_store %arg3[%c15, %c0_55, %c0_56], %131 {strides = array<i32>} : memref<16x16x128xf32, #tpu.memory_space<vmem>>, vector<1x16x128xf32>,
    return
  }
  func.func @transform_0(%arg0: i32) -> (i32, i32, i32) {
    %c0_i32 = arith.constant 0 : i32
    %c0_i32_0 = arith.constant 0 : i32
    %c0_i32_1 = arith.constant 0 : i32
    return %c0_i32, %arg0, %c0_i32_0 : i32, i32, i32
  }
  func.func @transform_1(%arg0: i32) -> (i32, i32) {
    %c0_i32 = arith.constant 0 : i32
    %c0_i32_0 = arith.constant 0 : i32
    %c0_i32_1 = arith.constant 0 : i32
    return %c0_i32, %c0_i32_0 : i32, i32
  }
  func.func @transform_2(%arg0: i32) -> (i32, i32, i32) {
    %c0_i32 = arith.constant 0 : i32
    %c0_i32_0 = arith.constant 0 : i32
    %c0_i32_1 = arith.constant 0 : i32
    return %c0_i32, %arg0, %c0_i32_0 : i32, i32, i32
  }
}

</mosaic_0001>

<bundles_post_ra>
// kernel: tpu_custom_call.1
= control target key start
LH: loop header
LB: loop body
LE: loop exit
PB: predicated region body
PF: predicated region fallthrough
CT: control target
= control target key end

     0   :  { %7 = vsyncpa [#allocation3], 0  ;;  %s1505_s0 = inlined_call_operand.hbm [shape: bf16[4,64,96], index: 0, kind: input, shape index: {}]   ;;  %s1506_s1 = inlined_call_operand.hbm [shape: bf16[96,128], index: 1, kind: input, shape index: {}]   ;;  %s1507_s2 = inlined_call_operand.hbm [shape: f32[16,64,128], index: 2, kind: output, shape index: {}]  }
   0x1   :  { %9 = vsyncpa [#allocation3 + $0x1], 0 }
   0x2   :  { %10 = vsyncpa [#allocation6], 0 }
   0x3   :  { %11 = vsyncpa [#allocation4], 0 }
   0x4   :  { %13 = vsyncpa [#allocation4 + $0x1], 0  ;;  %s1126_s9 = smov 0   ;;  %s1128_s10 = smov 0  }
   0x5   :  { %s1130_s11 = smov 0   ;;  %s1132_s12 = smov 0  }
   0x6 LB: > { %s1147_s13 = sadd.s32 4294967295, %s1090_s12   ;;  %s767_s14 = sadd.s32 4294967294, %s1090_s12   ;;  %s1090_s12 = sphi %s1132_s12, %s1521_s12   ;;  %s1086_s11 = sphi %s1130_s11, %s1520_s11   ;;  %s1082_s10 = sphi %s1128_s10, %s1519_s10   ;;  %s1078_s9 = sphi %s1126_s9, %s1518_s9  }
   0x7   : > { %s1151_s15 = sadd.s32 1, %s1090_s12   ;;  %s26_s16 = sadd.s32 1, %s1086_s11 }
   0x8   : > { %s23_s17 = ssub.s32 %s1090_s12, %s1151_s15  ;;  %p33_p0 = scmp.ne.s32.totalorder %s1086_s11, %s1082_s10 }
   0x9   : > { %p24_p1 = scmp.eq.s32.totalorder %s23_s17, 0  ;;  %p34_p2 = scmp.eq.s32.totalorder %s1090_s12, 0 }
   0xa   : > { %p39_p3 = scmp.ne.s32.totalorder %s1082_s10, %s1078_s9  ;;  %p40_p4 = scmp.eq.s32.totalorder %s1147_s13, 0 }
   0xb   : > { %s1163_s18 = scalar_select %p24_p1, %s1086_s11, %s26_s16  }
   0xc   : > { %p1165_p5 = por %p34_p2, %p33_p0  ;;  %p1171_p6 = por %p40_p4, %p39_p3 }
   0xd   : > { %p84_p7 = scmp.eq.s32.totalorder %s1147_s13, 3  ;;  %p90_p8 = scmp.eq.s32.totalorder %s767_s14, 3 }
   0xe   : > { %s1511_s20 = scalar_select %p1171_p6, 1, 0 }
   0xf   : > { %p768_p9 = scmp.ge.s32.totalorder %s1090_s12, 1  ;;  %p97_p10 = scmp.lt.s32.totalorder %s1090_s12, 5 }
  0x10   : > { %p1178_p11 = por %p84_p7, %p33_p0  ;;  %p1182_p12 = por %p90_p8, %p39_p3 }
  0x11   : > { %p1186_p13 = pnand %p768_p9, %p97_p10  ;;  %s1092_s24 = smov [#allocation5]  }
  0x12   : > { %s1512_s21 = scalar_select %p1178_p11, 1, 0 }
  0x13   : > { %s1513_s22 = scalar_select %p1182_p12, 1, 0 }
  0x14   : > { %p950_p1 = pneg %p1186_p13  ;;  %s109_s25 = sshll.u32 %s1092_s24, 4  ;;  %s110_s25 = int_to_ptr.vmem [resolvable:$true] %s109_s25 }
  0x15   : > { %s1033_s26 = scalar_lea.vmem %s110_s25, 768  ;;  %p1041_p8 = scmp.lt.s32.totalorder %s110_s25, %s110_s25 }
  0x16   : > { %p951_p2 = pnand %p950_p1, %p40_p4  ;;  %p1034_p7 = scmp.ne.s32.totalorder %s110_s25, %s1033_s26 }
  0x17   : > { %p1042_p6 = scmp.lt.s32.totalorder %s1033_s26, %s1033_s26 }
  0x18   : > { %p1024_p0 = pneg %p951_p2 }
  0x19   : > { %p1043_p12 = por %p1042_p6, %p1041_p8 }
  0x1a   : > { %p1036_p11 = pnand %p1034_p7, %p1024_p0 }
  0x1c   : > { %p1037_p3 = pneg %p1036_p11 }
  0x1e   : > { %p1044_p9 = pnand %p1043_p12, %p1037_p3 }
  0x20   : > { %1047 = shalt.err (!%p1044_p9)
}
  0x21   : > { %s1093_s27 = smov 64   ;;  %s1094_s28 = smov 4  }
  0x22   : > { %953 = dma.hbm_to_vmem [thread:$0]  (!%p951_p2), %s1506_s1, 768, %s110_s25, [#allocation6], %s1093_s27, %s1093_s27, %s1094_s28  }
  0x23   : > { %p770_p10 = scmp.ge.s32.totalorder %s1090_s12, 4 }
  0x25   : > { %119 = sbr.rel (%p770_p10) target bundleno = 55 (0x37), region = 20 }
  0x2a   : > { %s123_s3 = sand.u32 1, %s1086_s11   ;;  %s835_s4 = sshll.u32 %s1090_s12, 7 }
  0x2b   : > { %s771_s5 = sshll.u32 %s123_s3, 5  ;;  %s133_s8 = scalar_lea.hbm %s1505_s0, %s835_s4 }
  0x2c   : > { %s931_s14 = scalar_select %p1165_p5, [#allocation0], [#allocation12] }
  0x2d   : > { %s127_s16 = scalar_lea.vmem [#allocation2], %s771_s5  ;;  %s1095_s25 = smov 512  }
  0x2e   : > { %s146_s17 = sshll.u32 %s127_s16, 4  ;;  %s138_s24 = sld [smem:[%s931_s14]]   ;;  %s147_s17 = int_to_ptr.vmem [resolvable:$true] %s146_s17 }
  0x2f   : > { %932 = sst [smem:[#allocation9]] (%p1165_p5), %s1095_s25  ;;  %s1096_s26 = smov 128  }
  0x30   : > { %933 = sst [smem:[#allocation9 + $0x1]] (%p1165_p5), %s1096_s26  ;;  %s1097_s27 = smov 2  }
  0x31   : > { %934 = sst [smem:[#allocation9 + $0x2]] (%p1165_p5), %s1097_s27  ;;  %s1098_s28 = smov 64  }
  0x32   : > { %935 = sst [smem:[#allocation9 + $0x3]] (%p1165_p5), %s1098_s28  ;;  %s1099_s30 = smov 4  }
  0x33   : > { %936 = sst [smem:[#allocation9 + $0x4]] (%p1165_p5), %s1098_s28  ;;  %s124_s5 = scalar_lea.sflag [#allocation3], %s123_s3 }
  0x34   : > { %s774_s29 = sshll.u32 %s138_s24, 26  ;;  %937 = sst [smem:[#allocation9 + $0x5]] (%p1165_p5), %s1099_s30 }
  0x35   : > { %s775_s4 = sadd.s32 134217728, %s774_s29  ;;  %s1100_s6 = smov 131072  }
  0x36   : > { %938 = dma.general (%p1165_p5), %s133_s8, 512, %s147_s17, %s124_s5, %s1100_s6, [#allocation9], %s775_s4, 0  }
  0x37 PF: > { %171 = sbr.rel (%p1186_p13) target bundleno = 455 (0x1c7), region = 28  ;;  %s1222_s7 = sand.u32 (!%p1186_p13), 1, %s1082_s10  }
  0x38   : > { %s777_s14 = sshll.u32 (!%p1186_p13), %s1222_s7, 5  ;;  %s174_s16 = scalar_lea.sflag (!%p1186_p13), [#allocation3], %s1222_s7 }
  0x39   : > { %s1226_s24 = scalar_lea.vmem (!%p1186_p13), [#allocation2], %s777_s14  ;;  %p1515_p6 = scmp.ne.s32.totalorder (!%p1186_p13), %s1511_s20, 0 }
  0x3c   : > { %1065 = dma.done.wait (%p1515_p6), %s174_s16, 512  }
  0x3d   : > { %1067 = vsyncadd (%p1515_p6), %s174_s16, 4294966784 }
  0x3e   : > { %1069 = dma.done.wait (%p40_p4), [#allocation6], 768  }
  0x3f   : > { %1071 = vsyncadd (%p40_p4), [#allocation6], 4294966528  ;;  %v1101_v0 = vmov 0.0   ;;  %vm1102_vm0 = vmmov 0   ;;  %v1012_v1 = vld [vmem:[#allocation5 + $0x28] sm:$0xff]   ;;  %v1013_v2 = vld [vmem:[#allocation5 + $0x20] sm:$0xff]   ;;  %v217_v27 = vlaneseq }
  0x40   : > { %865 = vmatprep.subr.bf16.mxu0 %v1101_v0  ;;  %881 = vmatprep.subr.bf16.mxu1 %v1101_v0  ;;  %v1014_v3 = vld [vmem:[#allocation5 + $0x18] sm:$0xff]   ;;  %v1015_v4 = vld [vmem:[#allocation5 + $0x10] sm:$0xff]   ;;  %v1016_v5 = vld [vmem:[#allocation5 + $0x8] sm:$0xff]   ;;  %vm263_vm1 = vcmask 785408   ;;  %s1103_s19 = smov 64   ;;  %s779_s20 = sshll.u32 %s1222_s7, 8 }
  0x41   : > { %877 = vmatprep.mubr.msk.bf16.mxu0 %vm1102_vm0, %v1101_v0  ;;  %893 = vmatprep.mubr.msk.bf16.mxu1 %vm1102_vm0, %v1101_v0  ;;  %v1017_v6 = vld [vmem:[#allocation5] sm:$0xff]   ;;  %v1019_v8 = vld [vmem:[%s1226_s24 + $0x8] sm:$0xff]   ;;  %v1020_v9 = vld [vmem:[%s1226_s24 + $0x10] sm:$0xff]   ;;  %v1272_v28 = vand.u32 127, %v217_v27  ;;  %s1327_s23 = scalar_lea.vmem [#allocation7], %s779_s20  ;;  %s648_s3 = scalar_lea.sflag [#allocation4], %s1222_s7 }
  0x42   : > { %866 = vmatpush3.bf16.msra.mxu0 %v1012_v1  ;;  %882 = vmatpush3.bf16.msra.mxu1 %v1012_v1  ;;  %v1018_v7 = vld [vmem:[%s1226_s24] sm:$0xff]   ;;  %v1021_v10 = vld [vmem:[%s1226_s24 + $0x18] sm:$0xff]  }
  0x43   : > { %867 = vmatprep.subr.bf16.mxu0 %v1101_v0  ;;  %883 = vmatprep.subr.bf16.mxu1 %v1101_v0  ;;  %vm219_vm2 = vcmp.lt.s32.totalorder %v1272_v28, 64 }
  0x46   : > { %868 = vmatpush3.bf16.msra.mxu0 %v1013_v2  ;;  %884 = vmatpush3.bf16.msra.mxu1 %v1013_v2 }
  0x47   : > { %869 = vmatprep.subr.bf16.mxu0 %v1101_v0  ;;  %885 = vmatprep.subr.bf16.mxu1 %v1101_v0 }
  0x4a   : > { %870 = vmatpush3.bf16.msra.mxu0 %v1014_v3  ;;  %886 = vmatpush3.bf16.msra.mxu1 %v1014_v3 }
  0x4b   : > { %871 = vmatprep.subr.bf16.mxu0 %v1101_v0  ;;  %887 = vmatprep.subr.bf16.mxu1 %v1101_v0 }
  0x4e   : > { %872 = vmatpush3.bf16.msra.mxu0 %v1015_v4  ;;  %888 = vmatpush3.bf16.msra.mxu1 %v1015_v4 }
  0x4f   : > { %873 = vmatprep.subr.bf16.mxu0 %v1101_v0  ;;  %889 = vmatprep.subr.bf16.mxu1 %v1101_v0 }
  0x52   : > { %874 = vmatpush3.bf16.msra.mxu0 %v1016_v5  ;;  %890 = vmatpush3.bf16.msra.mxu1 %v1016_v5 }
  0x53   : > { %875 = vmatprep.subr.bf16.mxu0 %v1101_v0  ;;  %891 = vmatprep.subr.bf16.mxu1 %v1101_v0 }
  0x56   : > { %876 = vmatpush3.bf16.msra.mxu0 %v1017_v6  ;;  %892 = vmatpush3.bf16.msra.mxu1 %v1017_v6 }
  0x57   : > { %897 = vmatprep.subr.bf16.mxu0 %v1101_v0  ;;  %913 = vmatprep.subr.bf16.mxu1 %v1101_v0 }
  0x59   : > { %878 = vmatmul.mubr.msk.bf16.vlgmr.msra.gmra.mxu0 %vm263_vm1, %v1018_v7  ;;  %894 = vmatmul.mubr.msk.bf16.vlgmr.msra.gmra.mxu1 %vm263_vm1, %v1019_v8 }
  0x5a   : > { %898 = vmatpush3.bf16.msra.mxu0 %v1012_v1  ;;  %914 = vmatpush3.bf16.msra.mxu1 %v1012_v1 }
  0x5b   : > { %899 = vmatprep.subr.bf16.mxu0 %v1101_v0  ;;  %915 = vmatprep.subr.bf16.mxu1 %v1101_v0 }
  0x5c   : > { %909 = vmatprep.mubr.msk.bf16.mxu0 %vm1102_vm0, %v1101_v0  ;;  %925 = vmatprep.mubr.msk.bf16.mxu1 %vm1102_vm0, %v1101_v0 }
  0x5e   : > { %900 = vmatpush3.bf16.msra.mxu0 %v1013_v2  ;;  %916 = vmatpush3.bf16.msra.mxu1 %v1013_v2 }
  0x5f   : > { %901 = vmatprep.subr.bf16.mxu0 %v1101_v0  ;;  %917 = vmatprep.subr.bf16.mxu1 %v1101_v0 }
  0x62   : > { %902 = vmatpush3.bf16.msra.mxu0 %v1014_v3  ;;  %918 = vmatpush3.bf16.msra.mxu1 %v1014_v3 }
  0x63   : > { %903 = vmatprep.subr.bf16.mxu0 %v1101_v0  ;;  %919 = vmatprep.subr.bf16.mxu1 %v1101_v0 }
  0x66   : > { %904 = vmatpush3.bf16.msra.mxu0 %v1015_v4  ;;  %920 = vmatpush3.bf16.msra.mxu1 %v1015_v4 }
  0x67   : > { %905 = vmatprep.subr.bf16.mxu0 %v1101_v0  ;;  %921 = vmatprep.subr.bf16.mxu1 %v1101_v0 }
  0x6a   : > { %906 = vmatpush3.bf16.msra.mxu0 %v1016_v5  ;;  %922 = vmatpush3.bf16.msra.mxu1 %v1016_v5 }
  0x6b   : > { %907 = vmatprep.subr.bf16.mxu0 %v1101_v0  ;;  %923 = vmatprep.subr.bf16.mxu1 %v1101_v0 }
  0x6e   : > { %908 = vmatpush3.bf16.msra.mxu0 %v1017_v6  ;;  %924 = vmatpush3.bf16.msra.mxu1 %v1017_v6 }
  0x71   : > { %910 = vmatmul.mubr.msk.bf16.vlgmr.msra.gmra.mxu0 %vm263_vm1, %v1020_v9  ;;  %926 = vmatmul.mubr.msk.bf16.vlgmr.msra.gmra.mxu1 %vm263_vm1, %v1021_v10 }
 0x119   : > { %v1248_v11 = vpop.f32.mrf.mxu0  ;;  %v1250_v12 = vpop.f32.mrf.mxu1 }
 0x11a   : > { %370 = vrot.lane.b32.xlu1 %v1250_v12, %s1103_s19  ;;  %308 = vrot.lane.b32.xlu0 %v1248_v11, %s1103_s19  ;;  %v314_v29 = vsub.f32 0.0, %v1248_v11  ;;  %v376_v30 = vsub.f32 0.0, %v1250_v12 }
 0x11b   : > { %v879_v13 = vpop.f32.mrf.mxu0  ;;  %v895_v14 = vpop.f32.mrf.mxu1 }
 0x11d   : > { %v1254_v15 = vpop.f32.mrf.mxu0  ;;  %v1256_v16 = vpop.f32.mrf.mxu1 }
 0x11e   : > { %372 = vrot.lane.b32.xlu1 %v1256_v16, %s1103_s19  ;;  %310 = vrot.lane.b32.xlu0 %v1254_v15, %s1103_s19  ;;  %v377_v31 = vsub.f32 0.0, %v1256_v16  ;;  %v315_v46 = vsub.f32 0.0, %v1254_v15 }
 0x11f   : > { %v880_v17 = vpop.f32.mrf.mxu0  ;;  %v896_v18 = vpop.f32.mrf.mxu1 }
 0x131   : > { %v1260_v19 = vpop.f32.mrf.mxu0  ;;  %v1262_v20 = vpop.f32.mrf.mxu1 }
 0x132   : > { %432 = vrot.lane.b32.xlu0 %v1260_v19, %s1103_s19  ;;  %v438_v5 = vsub.f32 0.0, %v1260_v19  ;;  %v500_v7 = vsub.f32 0.0, %v1262_v20 }
 0x133   : > { %v911_v21 = vpop.f32.mrf.mxu0  ;;  %v927_v22 = vpop.f32.mrf.mxu1 }
 0x135   : > { %v1265_v23 = vpop.f32.mrf.mxu0  ;;  %v1267_v24 = vpop.f32.mrf.mxu1 }
 0x136   : > { %494 = vrot.lane.b32.xlu0 %v1262_v20, %s1103_s19  ;;  %434 = vrot.lane.b32.xlu1 %v1265_v23, %s1103_s19  ;;  %v439_v6 = vsub.f32 0.0, %v1265_v23  ;;  %v501_v13 = vsub.f32 0.0, %v1267_v24 }
 0x137   : > { %v912_v25 = vpop.f32.mrf.mxu0  ;;  %v928_v26 = vpop.f32.mrf.mxu1 }
 0x13a   : > { %496 = vrot.lane.b32.xlu1 %v1267_v24, %s1103_s19 }
 0x18c   : > { %v1279_v32 = vpop.permute.xlu1 %370  ;;  %v1281_v33 = vpop.permute.xlu0 %308 }
 0x18d   : > { %v374_v34 = vsel %vm219_vm2, %v1250_v12, %v1279_v32  ;;  %v1290_v35 = vsel %vm219_vm2, %v1279_v32, %v376_v30  ;;  %v312_v36 = vsel %vm219_vm2, %v1248_v11, %v1281_v33  ;;  %v1299_v37 = vsel %vm219_vm2, %v1281_v33, %v314_v29 }
 0x18e   : > { %v548_v38 = vmul.f32 %v374_v34, %v1250_v12  ;;  %v550_v39 = vmul.f32 %v1290_v35, %v1279_v32  ;;  %v504_v40 = vmul.f32 %v312_v36, %v1248_v11  ;;  %v506_v41 = vmul.f32 %v1299_v37, %v1281_v33 }
 0x18f   : > { %v512_v42 = vmul.f32 %v374_v34, %v1248_v11  ;;  %v514_v43 = vmul.f32 %v1290_v35, %v1281_v33  ;;  %v539_v44 = vmul.f32 %v1250_v12, %v312_v36  ;;  %v541_v45 = vmul.f32 %v1279_v32, %v1299_v37 }
 0x190   : > { %v552_v47 = vadd.f32 %v550_v39, %v548_v38  ;;  %v508_v48 = vadd.f32 %v506_v41, %v504_v40  ;;  %v1314_v49 = vpop.permute.xlu1 %372  ;;  %v1316_v50 = vpop.permute.xlu0 %310  ;;  %v575_v8 = vmul.f32 %v1260_v19, %v312_v36  ;;  %v584_v9 = vmul.f32 %v1260_v19, %v374_v34 }
 0x191   : > { %v516_v51 = vadd.f32 %v514_v43, %v512_v42  ;;  %v543_v52 = vadd.f32 %v541_v45, %v539_v44  ;;  %v375_v53 = vsel %vm219_vm2, %v1256_v16, %v1314_v49  ;;  %v1325_v54 = vsel %vm219_vm2, %v1314_v49, %v377_v31 }
 0x192   : > { %808 = vst [vmem:[%s1327_s23 + $0x50] sm:$0xff] %v552_v47  ;;  %510 = vst [vmem:[%s1327_s23] sm:$0xff] %v508_v48  ;;  %v549_v55 = vmul.f32 %v375_v53, %v1256_v16  ;;  %v551_v56 = vmul.f32 %v1325_v54, %v1314_v49  ;;  %v313_v57 = vsel %vm219_vm2, %v1254_v15, %v1316_v50 }
 0x193   : > { %v1341_v58 = vsel %vm219_vm2, %v1316_v50, %v315_v46  ;;  %800 = vst [vmem:[%s1327_s23 + $0x10] sm:$0xff] %v516_v51  ;;  %806 = vst [vmem:[%s1327_s23 + $0x40] sm:$0xff] %v543_v52  ;;  %v505_v59 = vmul.f32 %v313_v57, %v1254_v15  ;;  %v513_v61 = vmul.f32 %v375_v53, %v1254_v15 }
 0x194   : > { %v507_v60 = vmul.f32 %v1341_v58, %v1316_v50  ;;  %v515_v62 = vmul.f32 %v1325_v54, %v1316_v50  ;;  %v553_v63 = vadd.f32 %v551_v56, %v549_v55  ;;  %v540_v0 = vmul.f32 %v1256_v16, %v313_v57 }
 0x195   : > { %v542_v1 = vmul.f32 %v1314_v49, %v1341_v58  ;;  %v611_v10 = vmul.f32 %v1262_v20, %v312_v36  ;;  %v620_v17 = vmul.f32 %v1262_v20, %v374_v34  ;;  %v1367_v18 = vmul.f32 %v1265_v23, %v313_v57 }
 0x196   : > { %v509_v2 = vadd.f32 %v507_v60, %v505_v59  ;;  %v517_v3 = vadd.f32 %v515_v62, %v513_v61  ;;  %809 = vst [vmem:[%s1327_s23 + $0x58] sm:$0xff] %v553_v63  ;;  %v1370_v21 = vmul.f32 %v1265_v23, %v375_v53  ;;  %v1373_v22 = vmul.f32 %v1267_v24, %v313_v57 }
 0x197   : > { %v544_v4 = vadd.f32 %v542_v1, %v540_v0  ;;  %v1391_v47 = vmul.f32 %v1267_v24, %v375_v53 }
 0x198   : > { %511 = vst [vmem:[%s1327_s23 + $0x8] sm:$0xff] %v509_v2  ;;  %801 = vst [vmem:[%s1327_s23 + $0x18] sm:$0xff] %v517_v3 }
 0x199   : > { %807 = vst [vmem:[%s1327_s23 + $0x48] sm:$0xff] %v544_v4 }
 0x1a4   : > { %v433_v14 = vpop.permute.xlu0 %432 }
 0x1a5   : > { %v436_v25 = vsel %vm219_vm2, %v1260_v19, %v433_v14  ;;  %v440_v26 = vsel %vm219_vm2, %v433_v14, %v438_v5  ;;  %v577_v27 = vmul.f32 %v433_v14, %v1299_v37  ;;  %v586_v29 = vmul.f32 %v433_v14, %v1290_v35 }
 0x1a6   : > { %v521_v30 = vmul.f32 %v436_v25, %v1248_v11  ;;  %v523_v31 = vmul.f32 %v440_v26, %v1281_v33  ;;  %v557_v34 = vmul.f32 %v436_v25, %v1250_v12  ;;  %v559_v36 = vmul.f32 %v440_v26, %v1279_v32 }
 0x1a7   : > { %v579_v38 = vadd.f32 %v577_v27, %v575_v8  ;;  %v588_v39 = vadd.f32 %v586_v29, %v584_v9  ;;  %v593_v40 = vmul.f32 %v436_v25, %v1260_v19  ;;  %v595_v41 = vmul.f32 %v440_v26, %v433_v14 }
 0x1a8   : > { %v525_v42 = vadd.f32 %v523_v31, %v521_v30  ;;  %v561_v43 = vadd.f32 %v559_v36, %v557_v34  ;;  %v629_v44 = vmul.f32 %v1262_v20, %v436_v25  ;;  %v495_v45 = vpop.permute.xlu0 %494  ;;  %v1388_v46 = vpop.permute.xlu1 %434 }
 0x1a9   : > { %814 = vst [vmem:[%s1327_s23 + $0x80] sm:$0xff] %v579_v38  ;;  %816 = vst [vmem:[%s1327_s23 + $0x90] sm:$0xff] %v588_v39  ;;  %v597_v48 = vadd.f32 %v595_v41, %v593_v40  ;;  %v498_v51 = vsel %vm219_vm2, %v1262_v20, %v495_v45  ;;  %v502_v52 = vsel %vm219_vm2, %v495_v45, %v500_v7 }
 0x1aa   : > { %v613_v55 = vmul.f32 %v495_v45, %v1299_v37  ;;  %802 = vst [vmem:[%s1327_s23 + $0x20] sm:$0xff] %v525_v42  ;;  %810 = vst [vmem:[%s1327_s23 + $0x60] sm:$0xff] %v561_v43  ;;  %v530_v56 = vmul.f32 %v498_v51, %v1248_v11  ;;  %v532_v53 = vmul.f32 %v502_v52, %v1281_v33 }
 0x1ab   : > { %v566_v57 = vmul.f32 %v498_v51, %v1250_v12  ;;  %v568_v59 = vmul.f32 %v502_v52, %v1279_v32  ;;  %818 = vst [vmem:[%s1327_s23 + $0xa0] sm:$0xff] %v597_v48  ;;  %v602_v60 = vmul.f32 %v498_v51, %v1260_v19  ;;  %v604_v61 = vmul.f32 %v502_v52, %v433_v14 }
 0x1ac   : > { %v615_v62 = vadd.f32 %v613_v55, %v611_v10  ;;  %v622_v37 = vmul.f32 %v495_v45, %v1290_v35  ;;  %v534_v63 = vadd.f32 %v532_v53, %v530_v56  ;;  %v631_v11 = vmul.f32 %v495_v45, %v440_v26  ;;  %v497_v4 = vpop.permute.xlu1 %496 }
 0x1ad   : > { %v570_v0 = vadd.f32 %v568_v59, %v566_v57  ;;  %v638_v33 = vmul.f32 %v498_v51, %v1262_v20  ;;  %v606_v1 = vadd.f32 %v604_v61, %v602_v60  ;;  %v640_v32 = vmul.f32 %v502_v52, %v495_v45 }
 0x1ae   : > { %822 = vst [vmem:[%s1327_s23 + $0xc0] sm:$0xff] %v615_v62  ;;  %v624_v12 = vadd.f32 %v622_v37, %v620_v17  ;;  %v437_v19 = vsel %vm219_vm2, %v1265_v23, %v1388_v46  ;;  %804 = vst [vmem:[%s1327_s23 + $0x30] sm:$0xff] %v534_v63  ;;  %v633_v35 = vadd.f32 %v631_v11, %v629_v44 }
 0x1af   : > { %812 = vst [vmem:[%s1327_s23 + $0x70] sm:$0xff] %v570_v0  ;;  %v441_v2 = vsel %vm219_vm2, %v1388_v46, %v439_v6  ;;  %v522_v20 = vmul.f32 %v437_v19, %v1254_v15  ;;  %v558_v3 = vmul.f32 %v437_v19, %v1256_v16  ;;  %820 = vst [vmem:[%s1327_s23 + $0xb0] sm:$0xff] %v606_v1 }
 0x1b0   : > { %824 = vst [vmem:[%s1327_s23 + $0xd0] sm:$0xff] %v624_v12  ;;  %v642_v5 = vadd.f32 %v640_v32, %v638_v33  ;;  %v524_v7 = vmul.f32 %v441_v2, %v1316_v50  ;;  %v560_v8 = vmul.f32 %v441_v2, %v1314_v49  ;;  %v578_v9 = vmul.f32 %v1388_v46, %v1341_v58 }
 0x1b1   : > { %826 = vst [vmem:[%s1327_s23 + $0xe0] sm:$0xff] %v633_v35  ;;  %v587_v6 = vmul.f32 %v1388_v46, %v1325_v54  ;;  %v594_v10 = vmul.f32 %v437_v19, %v1265_v23  ;;  %v596_v14 = vmul.f32 %v441_v2, %v1388_v46  ;;  %v630_v17 = vmul.f32 %v1267_v24, %v437_v19 }
 0x1b2   : > { %828 = vst [vmem:[%s1327_s23 + $0xf0] sm:$0xff] %v642_v5  ;;  %v526_v25 = vadd.f32 %v524_v7, %v522_v20  ;;  %v562_v26 = vadd.f32 %v560_v8, %v558_v3  ;;  %v580_v27 = vadd.f32 %v578_v9, %v1367_v18  ;;  %v499_v29 = vsel %vm219_vm2, %v1267_v24, %v497_v4 }
 0x1b3   : > { %v589_v30 = vadd.f32 %v587_v6, %v1370_v21  ;;  %v598_v31 = vadd.f32 %v596_v14, %v594_v10  ;;  %v503_v34 = vsel %vm219_vm2, %v497_v4, %v501_v13  ;;  %v531_v36 = vmul.f32 %v499_v29, %v1254_v15 }
 0x1b4   : > { %803 = vst [vmem:[%s1327_s23 + $0x28] sm:$0xff] %v526_v25  ;;  %811 = vst [vmem:[%s1327_s23 + $0x68] sm:$0xff] %v562_v26  ;;  %v533_v38 = vmul.f32 %v503_v34, %v1316_v50  ;;  %v567_v18 = vmul.f32 %v499_v29, %v1256_v16  ;;  %v569_v39 = vmul.f32 %v503_v34, %v1314_v49 }
 0x1b5   : > { %815 = vst [vmem:[%s1327_s23 + $0x88] sm:$0xff] %v580_v27  ;;  %v603_v21 = vmul.f32 %v499_v29, %v1265_v23  ;;  %817 = vst [vmem:[%s1327_s23 + $0x98] sm:$0xff] %v589_v30  ;;  %v605_v28 = vmul.f32 %v503_v34, %v1388_v46  ;;  %v614_v15 = vmul.f32 %v497_v4, %v1341_v58 }
 0x1b6   : > { %819 = vst [vmem:[%s1327_s23 + $0xa8] sm:$0xff] %v598_v31  ;;  %v623_v13 = vmul.f32 %v497_v4, %v1325_v54  ;;  %v632_v50 = vmul.f32 %v497_v4, %v441_v2  ;;  %v535_v16 = vadd.f32 %v533_v38, %v531_v36  ;;  %v571_v49 = vadd.f32 %v569_v39, %v567_v18 }
 0x1b7   : > { %v639_v23 = vmul.f32 %v499_v29, %v1267_v24  ;;  %v641_v40 = vmul.f32 %v503_v34, %v497_v4  ;;  %v607_v41 = vadd.f32 %v605_v28, %v603_v21  ;;  %v616_v42 = vadd.f32 %v614_v15, %v1373_v22 }
 0x1b8   : > { %v625_v43 = vadd.f32 %v623_v13, %v1391_v47  ;;  %v634_v44 = vadd.f32 %v632_v50, %v630_v17  ;;  %805 = vst [vmem:[%s1327_s23 + $0x38] sm:$0xff] %v535_v16  ;;  %813 = vst [vmem:[%s1327_s23 + $0x78] sm:$0xff] %v571_v49 }
 0x1b9   : > { %v643_v58 = vadd.f32 %v641_v40, %v639_v23  ;;  %821 = vst [vmem:[%s1327_s23 + $0xb8] sm:$0xff] %v607_v41  ;;  %823 = vst [vmem:[%s1327_s23 + $0xc8] sm:$0xff] %v616_v42 }
 0x1ba   : > { %825 = vst [vmem:[%s1327_s23 + $0xd8] sm:$0xff] %v625_v43  ;;  %827 = vst [vmem:[%s1327_s23 + $0xe8] sm:$0xff] %v634_v44 }
 0x1bb   : > { %829 = vst [vmem:[%s1327_s23 + $0xf8] sm:$0xff] %v643_v58 }
 0x1bc   : > { %s836_s8 = sshll.u32 %s1147_s13, 8  ;;  %s671_s17 = sshll.u32 %s1327_s23, 4  ;;  %s672_s17 = int_to_ptr.vmem [resolvable:$true] %s671_s17 }
 0x1bd   : > { %s660_s27 = scalar_lea.hbm %s1507_s2, %s836_s8  ;;  %s1104_s28 = smov 256  }
 0x1be   : > { %p1516_p4 = scmp.ne.s32.totalorder %s1512_s21, 0  ;;  %s1105_s29 = smov 1024  }
 0x1bf   : > { %s1106_s30 = smov 2   ;;  %s1107_s4 = smov 128  }
 0x1c0   : > { %942 = sst [smem:[#allocation11]] (%p1516_p4), %s1104_s28  ;;  %s1108_s13 = smov 8  }
 0x1c1   : > { %943 = sst [smem:[#allocation11 + $0x1]] (%p1516_p4), %s1105_s29  ;;  %s1109_s5 = smov 131072  }
 0x1c2   : > { %944 = sst [smem:[#allocation11 + $0x2]] (%p1516_p4), %s1106_s30  ;;  %s1110_s6 = smov 0  }
 0x1c3   : > { %945 = sst [smem:[#allocation11 + $0x3]] (%p1516_p4), %s1107_s4 }
 0x1c4   : > { %946 = sst [smem:[#allocation11 + $0x4]] (%p1516_p4), %s1107_s4 }
 0x1c5   : > { %947 = sst [smem:[#allocation11 + $0x5]] (%p1516_p4), %s1108_s13 }
 0x1c6   : > { %948 = dma.general (%p1516_p4), %s672_s17, 4096, %s660_s27, %s648_s3, %s1109_s5, [#allocation11], %s1110_s6, 0  }
 0x1c7 PF: > { %p960_p5 = scmp.ge.s32.totalorder %s1090_s12, 2  ;;  %s699_s7 = sand.u32 1, %s1078_s9  }
 0x1c8   : > { %p1517_p11 = scmp.ne.s32.totalorder %s1513_s22, 0  ;;  %s700_s14 = scalar_lea.sflag [#allocation4], %s699_s7 }
 0x1ca   : > { %p955_p12 = pnand %p960_p5, %p1517_p11 }
 0x1cc   : > { %p956_p13 = pneg %p955_p12 }
 0x1ce   : > { %1073 = dma.done.wait (%p956_p13), %s700_s14, 4096  }
 0x1cf   : > { %1075 = vsyncadd (%p956_p13), %s700_s14, 4294963200  ;;  %p16_p1 = scmp.ge.s32.totalorder %s1151_s15, 6   ;;  %s1518_s9 = smov %s1082_s10 }
 0x1d0   : > { %s1519_s10 = smov %s1086_s11  ;;  %s1520_s11 = smov %s1163_s18 }
 0x1d1   : > { %s1521_s12 = smov %s1151_s15  ;;  %18 = sbr.rel (!%p16_p1) target bundleno = 6 (0x6), region = 105 }
 0x1d6   :  { %705 = vsyncpa [#allocation3], 1 }
 0x1d7   :  { %707 = vsyncpa [#allocation3 + $0x1], 1 }
 0x1d8   :  { %708 = vsyncpa [#allocation6], 1 }
 0x1d9   :  { %709 = vsyncpa [#allocation4], 1 }
 0x1da   :  { %711 = vsyncpa [#allocation4 + $0x1], 1 }

</bundles_post_ra>
